<compile_context>
chip_gen: v5e
topology: v5e:2x2
jax: 0.10.0
libtpu: 0.0.40
codegen_flags: <defaults>
</compile_context>

<pallas_src>
import jax
import jax.numpy as jnp
from jax import lax
from jax.experimental import pallas as pl
from jax.experimental.pallas import tpu as pltpu

GRID_SIZE = 10
INPUT_SIZE = GRID_SIZE * GRID_SIZE  # 100
H1 = 128
H2 = 64
OUT = 2

COMPUTE_DTYPE = jnp.bfloat16  # MXU operand dtype; accumulation stays f32
TB_CAP = 4096                 # keeps VMEM per step well under 32 MiB scoped default


def _round_up(a, m):
    return (a + m - 1) // m * m


def _choose_tile(B):
    """Return (tb, b_pad).

    Small/moderate batch: a single tile (grid=1), so tb == b_pad and only the
    sublane (multiple-of-8) constraint applies.
    Large batch: >=2 grid steps (v7x megacore sharding); tb must then be a
    multiple of 128 because it is the lane dim of the transposed output block.
    """
    if B <= 1024:
        tb = max(8, _round_up(B, 8))
        return tb, tb
    tb = min(TB_CAP, _round_up(pl.cdiv(B, 2), 128))
    b_pad = _round_up(B, tb)
    return tb, b_pad


def _fcn_kernel(x_ref, w1_ref, b1_ref, w2_ref, b2_ref, w3t_ref, b3t_ref, ot_ref):
    # One batch tile per grid step; all three matmuls + ReLUs fused.
    x = x_ref[...].astype(w1_ref.dtype)  # f32 -> bf16 in-kernel (VPU slack)
    h1 = jnp.dot(x, w1_ref[...], preferred_element_type=jnp.float32) + b1_ref[...]
    h1 = jnp.maximum(h1, 0.0).astype(w2_ref.dtype)
    h2 = jnp.dot(h1, w2_ref[...], preferred_element_type=jnp.float32) + b2_ref[...]
    h2 = jnp.maximum(h2, 0.0).astype(w3t_ref.dtype)
    # Final layer computed transposed: (OUT, H2) contracted with (tb, H2) on the
    # H2 axis ("NT" matmul) -> (OUT, tb) lane-dense result, unmasked stores.
    out_t = lax.dot_general(
        w3t_ref[...], h2,
        dimension_numbers=(((1,), (1,)), ((), ())),
        preferred_element_type=jnp.float32) + b3t_ref[...]
    ot_ref[...] = out_t.astype(ot_ref.dtype)


def fcn_forward(x, params, *, compute_dtype=COMPUTE_DTYPE):
    """x: (B, INPUT_SIZE) float32 -> (B, OUT) float32."""
    w1, b1, w2, b2, w3, b3 = params
    B = x.shape[0]

    tb, b_pad = _choose_tile(B)
    if b_pad != B:
        x = jnp.pad(x, ((0, b_pad - B), (0, 0)))  # row pad only (tiny)

    # Weights are tiny (~50 KiB); cast/transpose once in the wrapper.
    w1_c = w1.astype(compute_dtype)                       # (100, 128)
    w2_c = w2.astype(compute_dtype)                       # (128, 64)
    w3t_c = w3.T.astype(compute_dtype)                    # (2, 64)
    b1_f = b1.reshape(1, H1).astype(jnp.float32)
    b2_f = b2.reshape(1, H2).astype(jnp.float32)
    b3t_f = b3.reshape(OUT, 1).astype(jnp.float32)        # column bias for (2, tb)

    grid = (b_pad // tb,)
    resident = lambda shape: pl.BlockSpec(shape, lambda i: (0, 0))

    flops = 2 * b_pad * (INPUT_SIZE * H1 + H1 * H2 + H2 * OUT)
    bytes_accessed = (
        b_pad * INPUT_SIZE * 4                              # x (f32, read once)
        + b_pad * OUT * 4                                   # output (f32)
        + (INPUT_SIZE * H1 + H1 * H2 + H2 * OUT) * 2        # weights (bf16)
        + (H1 + H2 + OUT) * 4)                              # biases (f32)

    out_t = pl.pallas_call(
        _fcn_kernel,
        out_shape=jax.ShapeDtypeStruct((OUT, b_pad), jnp.float32),
        grid=grid,
        in_specs=[
            pl.BlockSpec((tb, INPUT_SIZE), lambda i: (i, 0)),   # x: tiled on batch
            resident((INPUT_SIZE, H1)), resident((1, H1)),      # w1, b1 (resident)
            resident((H1, H2)), resident((1, H2)),              # w2, b2
            resident((OUT, H2)), resident((OUT, 1)),            # w3^T, b3^T
        ],
        out_specs=pl.BlockSpec((OUT, tb), lambda i: (0, i)),    # lane-dense output
        compiler_params=pltpu.CompilerParams(
            dimension_semantics=("parallel",)),
        cost_estimate=pl.CostEstimate(
            flops=flops, transcendentals=0, bytes_accessed=bytes_accessed),
    )(x, w1_c, b1_f, w2_c, b2_f, w3t_c, b3t_f)

    return out_t[:, :B].T


def init_params(key):
    """Deterministic init matching torch.nn.Linear default (uniform +/- 1/sqrt(fan_in))."""
    ks = jax.random.split(key, 6)

    def linear(kw, kb, fan_in, fan_out):
        bound = 1.0 / jnp.sqrt(jnp.float32(fan_in))
        w = jax.random.uniform(kw, (fan_in, fan_out), jnp.float32, -bound, bound)
        b = jax.random.uniform(kb, (1, fan_out), jnp.float32, -bound, bound)
        return w, b

    w1, b1 = linear(ks[0], ks[1], INPUT_SIZE, H1)
    w2, b2 = linear(ks[2], ks[3], H1, H2)
    w3, b3 = linear(ks[4], ks[5], H2, OUT)
    return (w1, b1, w2, b2, w3, b3)


def reference_forward_f32(x, params):
    w1, b1, w2, b2, w3, b3 = params
    h1 = jnp.maximum(x @ w1 + b1, 0.0)
    h2 = jnp.maximum(h1 @ w2 + b2, 0.0)
    return h2 @ w3 + b3


def reference_forward_bf16(x, params, compute_dtype=COMPUTE_DTYPE):
    # Mirrors the kernel's mixed precision (bf16 operands, f32 accumulation).
    w1, b1, w2, b2, w3, b3 = params
    xc = x.astype(compute_dtype)
    h1 = jnp.dot(xc, w1.astype(compute_dtype),
                 preferred_element_type=jnp.float32) + b1
    h1 = jnp.maximum(h1, 0.0).astype(compute_dtype)
    h2 = jnp.dot(h1, w2.astype(compute_dtype),
                 preferred_element_type=jnp.float32) + b2
    h2 = jnp.maximum(h2, 0.0).astype(compute_dtype)
    return jnp.dot(h2, w3.astype(compute_dtype),
                   preferred_element_type=jnp.float32) + b3


def _check(x, params):
    out = jax.block_until_ready(fcn_forward(x, params))
    assert out.shape == (x.shape[0], OUT), out.shape
    # Tight check vs a reference using the same mixed precision as the kernel.
    ref_mixed = reference_forward_bf16(x, params)
    assert jnp.allclose(out, ref_mixed, atol=1e-2, rtol=1e-2), \
        f"mixed-precision mismatch, max abs err {jnp.max(jnp.abs(out - ref_mixed))}"
    # Loose check vs the pure-f32 PyTorch-equivalent module (bf16 operands
    # introduce ~1% relative error).
    ref_f32 = reference_forward_f32(x, params)
    assert jnp.allclose(out, ref_f32, atol=5e-2, rtol=5e-2), \
        f"f32 reference mismatch, max abs err {jnp.max(jnp.abs(out - ref_f32))}"
    return out


if __name__ == "__main__":
    key = jax.random.PRNGKey(0)
    k_x, k_x2, k_p = jax.random.split(key, 3)
    params = init_params(k_p)

    # Small batch (grid = 1, single tile).
    x_small = jax.random.normal(k_x, (8, INPUT_SIZE), jnp.float32)
    _check(x_small, params)

    # Larger, non-aligned batch exercising the multi-step grid + row padding.
    x_big = jax.random.normal(k_x2, (1600, INPUT_SIZE), jnp.float32)
    _check(x_big, params)

    print("KERNEL_OK")
</pallas_src>

<mosaic_0001>
module attributes {stable_mosaic.version = 11 : i64} {
  func.func @_fcn_kernel(%arg0: i32, %arg1: memref<8x100xf32, #tpu.memory_space<vmem>>, %arg2: memref<100x128xbf16, #tpu.memory_space<vmem>>, %arg3: memref<1x128xf32, #tpu.memory_space<vmem>>, %arg4: memref<128x64xbf16, #tpu.memory_space<vmem>>, %arg5: memref<1x64xf32, #tpu.memory_space<vmem>>, %arg6: memref<2x64xbf16, #tpu.memory_space<vmem>>, %arg7: memref<2x1xf32, #tpu.memory_space<vmem>>, %arg8: memref<2x8xf32, #tpu.memory_space<vmem>>) attributes {dimension_semantics = [#tpu.dimension_semantics<parallel>], iteration_bounds = array<i64: 1>, scalar_prefetch = 0 : i64, scratch_operands = 0 : i64, tpu.core_type = #tpu.core_type<tc>, window_params = [{transform_indices = @transform_0, window_bounds = array<i64: 8, 100>}, {pipeline_mode = #tpu.pipeline_mode<synchronous>, transform_indices = @transform_1, window_bounds = array<i64: 100, 128>}, {pipeline_mode = #tpu.pipeline_mode<synchronous>, transform_indices = @transform_2, window_bounds = array<i64: 1, 128>}, {pipeline_mode = #tpu.pipeline_mode<synchronous>, transform_indices = @transform_3, window_bounds = array<i64: 128, 64>}, {pipeline_mode = #tpu.pipeline_mode<synchronous>, transform_indices = @transform_4, window_bounds = array<i64: 1, 64>}, {pipeline_mode = #tpu.pipeline_mode<synchronous>, transform_indices = @transform_5, window_bounds = array<i64: 2, 64>}, {pipeline_mode = #tpu.pipeline_mode<synchronous>, transform_indices = @transform_6, window_bounds = array<i64: 2, 1>}, {transform_indices = @transform_7, window_bounds = array<i64: 2, 8>}]} {
    %c0 = arith.constant 0 : index
    %c0_0 = arith.constant 0 : index
    %0 = vector.load %arg1[%c0, %c0_0] : memref<8x100xf32, #tpu.memory_space<vmem>>, vector<8x100xf32>
    %1 = arith.truncf %0 : vector<8x100xf32> to vector<8x100xbf16>
    %c0_1 = arith.constant 0 : index
    %c0_2 = arith.constant 0 : index
    %2 = vector.load %arg2[%c0_1, %c0_2] : memref<100x128xbf16, #tpu.memory_space<vmem>>, vector<100x128xbf16>
    %cst = arith.constant dense<0.000000e+00> : vector<8x128xf32>
    %3 = tpu.matmul %1, %2, %cst {dimension_numbers = #tpu.dot_dimension_numbers<[1], [0], [0], [1], [0, 0, 1, 1], [], []>} : vector<8x100xbf16>, vector<100x128xbf16>, vector<8x128xf32> -> vector<8x128xf32>
    %c0_3 = arith.constant 0 : index
    %c0_4 = arith.constant 0 : index
    %4 = vector.load %arg3[%c0_3, %c0_4] : memref<1x128xf32, #tpu.memory_space<vmem>>, vector<1x128xf32>
    %5 = vector.broadcast %4 : vector<1x128xf32> to vector<8x128xf32>
    %6 = arith.addf %3, %5 : vector<8x128xf32>
    %cst_5 = arith.constant 0.000000e+00 : f32
    %7 = vector.broadcast %cst_5 : f32 to vector<8x128xf32>
    %8 = arith.maximumf %6, %7 : vector<8x128xf32>
    %9 = arith.truncf %8 : vector<8x128xf32> to vector<8x128xbf16>
    %c0_6 = arith.constant 0 : index
    %c0_7 = arith.constant 0 : index
    %10 = vector.load %arg4[%c0_6, %c0_7] : memref<128x64xbf16, #tpu.memory_space<vmem>>, vector<128x64xbf16>
    %cst_8 = arith.constant dense<0.000000e+00> : vector<8x64xf32>
    %11 = tpu.matmul %9, %10, %cst_8 {dimension_numbers = #tpu.dot_dimension_numbers<[1], [0], [0], [1], [0, 0, 1, 1], [], []>} : vector<8x128xbf16>, vector<128x64xbf16>, vector<8x64xf32> -> vector<8x64xf32>
    %c0_9 = arith.constant 0 : index
    %c0_10 = arith.constant 0 : index
    %12 = vector.load %arg5[%c0_9, %c0_10] : memref<1x64xf32, #tpu.memory_space<vmem>>, vector<1x64xf32>
    %13 = vector.broadcast %12 : vector<1x64xf32> to vector<8x64xf32>
    %14 = arith.addf %11, %13 : vector<8x64xf32>
    %cst_11 = arith.constant 0.000000e+00 : f32
    %15 = vector.broadcast %cst_11 : f32 to vector<8x64xf32>
    %16 = arith.maximumf %14, %15 : vector<8x64xf32>
    %17 = arith.truncf %16 : vector<8x64xf32> to vector<8x64xbf16>
    %c0_12 = arith.constant 0 : index
    %c0_13 = arith.constant 0 : index
    %18 = vector.load %arg6[%c0_12, %c0_13] : memref<2x64xbf16, #tpu.memory_space<vmem>>, vector<2x64xbf16>
    %cst_14 = arith.constant dense<0.000000e+00> : vector<2x8xf32>
    %19 = tpu.matmul %18, %17, %cst_14 {dimension_numbers = #tpu.dot_dimension_numbers<[1], [1], [0], [0], [0, 0, 1, 0], [], []>} : vector<2x64xbf16>, vector<8x64xbf16>, vector<2x8xf32> -> vector<2x8xf32>
    %c0_15 = arith.constant 0 : index
    %c0_16 = arith.constant 0 : index
    %20 = vector.load %arg7[%c0_15, %c0_16] : memref<2x1xf32, #tpu.memory_space<vmem>>, vector<2x1xf32>
    %21 = vector.broadcast %20 : vector<2x1xf32> to vector<2x8xf32>
    %22 = arith.addf %19, %21 : vector<2x8xf32>
    %c0_17 = arith.constant 0 : index
    %c0_18 = arith.constant 0 : index
    %23 = vector.load %arg8[%c0_17, %c0_18] : memref<2x8xf32, #tpu.memory_space<vmem>>, vector<2x8xf32>
    tpu.vector_store %arg8[%c0_17, %c0_18], %22 {strides = array<i32>} : memref<2x8xf32, #tpu.memory_space<vmem>>, vector<2x8xf32>,
    return
  }
  func.func @transform_0(%arg0: i32) -> (i32, i32) {
    %c0_i32 = arith.constant 0 : i32
    %c0_i32_0 = arith.constant 0 : i32
    return %arg0, %c0_i32 : i32, i32
  }
  func.func @transform_1(%arg0: i32) -> (i32, i32) {
    %c0_i32 = arith.constant 0 : i32
    %c0_i32_0 = arith.constant 0 : i32
    %c0_i32_1 = arith.constant 0 : i32
    return %c0_i32, %c0_i32_0 : i32, i32
  }
  func.func @transform_2(%arg0: i32) -> (i32, i32) {
    %c0_i32 = arith.constant 0 : i32
    %c0_i32_0 = arith.constant 0 : i32
    %c0_i32_1 = arith.constant 0 : i32
    return %c0_i32, %c0_i32_0 : i32, i32
  }
  func.func @transform_3(%arg0: i32) -> (i32, i32) {
    %c0_i32 = arith.constant 0 : i32
    %c0_i32_0 = arith.constant 0 : i32
    %c0_i32_1 = arith.constant 0 : i32
    return %c0_i32, %c0_i32_0 : i32, i32
  }
  func.func @transform_4(%arg0: i32) -> (i32, i32) {
    %c0_i32 = arith.constant 0 : i32
    %c0_i32_0 = arith.constant 0 : i32
    %c0_i32_1 = arith.constant 0 : i32
    return %c0_i32, %c0_i32_0 : i32, i32
  }
  func.func @transform_5(%arg0: i32) -> (i32, i32) {
    %c0_i32 = arith.constant 0 : i32
    %c0_i32_0 = arith.constant 0 : i32
    %c0_i32_1 = arith.constant 0 : i32
    return %c0_i32, %c0_i32_0 : i32, i32
  }
  func.func @transform_6(%arg0: i32) -> (i32, i32) {
    %c0_i32 = arith.constant 0 : i32
    %c0_i32_0 = arith.constant 0 : i32
    %c0_i32_1 = arith.constant 0 : i32
    return %c0_i32, %c0_i32_0 : i32, i32
  }
  func.func @transform_7(%arg0: i32) -> (i32, i32) {
    %c0_i32 = arith.constant 0 : i32
    %c0_i32_0 = arith.constant 0 : i32
    return %c0_i32, %arg0 : i32, i32
  }
}

</mosaic_0001>

<bundles_post_ra>
// kernel: tpu_custom_call.1
= control target key start
LH: loop header
LB: loop body
LE: loop exit
PB: predicated region body
PF: predicated region fallthrough
CT: control target
= control target key end

     0   :  { %vm90_vm0 = vcmask 1041408   ;;  %s445_s0 = inlined_call_operand.vmem [shape: f32[8,100], index: 0, kind: input, shape index: {}]   ;;  %s446_s1 = inlined_call_operand.vmem [shape: bf16[100,128], index: 1, kind: input, shape index: {}]   ;;  %s447_s2 = inlined_call_operand.vmem [shape: f32[1,128], index: 2, kind: input, shape index: {}]   ;;  %s448_s3 = inlined_call_operand.vmem [shape: bf16[128,64], index: 3, kind: input, shape index: {}]   ;;  %s449_s4 = inlined_call_operand.vmem [shape: f32[1,64], index: 4, kind: input, shape index: {}]   ;;  %s450_s5 = inlined_call_operand.vmem [shape: bf16[2,64], index: 5, kind: input, shape index: {}]   ;;  %s451_s6 = inlined_call_operand.vmem [shape: f32[2,1], index: 6, kind: input, shape index: {}]   ;;  %s452_s7 = inlined_call_operand.hbm [shape: f32[2,8], index: 7, kind: output, shape index: {}]  }
   0x1   :  { %v42_v0 = vld [vmem:[%s446_s1 + $0x30] sm:$0x3]  ;;  %v308_v2 = vld [vmem:[%s448_s3 + $0x38] sm:$0xff]  ;;  %v300_v6 = vld [vmem:[%s446_s1 + $0x28] sm:$0xff] }
   0x2   :  { %v72_v1 = vunpack.c.l.b16 %v42_v0  ;;  %177 = vmatpush.bf16.msra.mxu1 %v308_v2  ;;  %v307_v4 = vld [vmem:[%s448_s3 + $0x30] sm:$0xff] }
   0x4   :  { %v79_v3 = vpack.c.b16 %v72_v1, %v72_v1 }
   0x6   :  { %v92_v5 = vsel %vm90_vm0, %v79_v3, 0 }
   0x7   :  { %95 = vmatpush.bf16.msra.mxu0 %v92_v5 }
   0x8   :  { %12 = vsyncpa [#allocation3], 0  ;;  %178 = vmatpush.bf16.msra.mxu1 %v307_v4  ;;  %v306_v7 = vld [vmem:[%s448_s3 + $0x28] sm:$0xff]  ;;  %v299_v8 = vld [vmem:[%s446_s1 + $0x20] sm:$0xff]  ;;  %vm86_vm1 = vcmask 818176   ;;  %v340_v27 = vmov 0  }
   0x9   :  { %v305_v9 = vld [vmem:[%s448_s3 + $0x20] sm:$0xff]  ;;  %v298_v10 = vld [vmem:[%s446_s1 + $0x18] sm:$0xff]  ;;  %v297_v12 = vld [vmem:[%s446_s1 + $0x10] sm:$0xff]  ;;  %311 = vset.pattern.permute.xlu0 %v340_v27  ;;  %vm199_vm2 = vcmask 523264   ;;  %vm219_vm3 = vcmask 58368  }
   0xa   :  { %v304_v11 = vld [vmem:[%s448_s3 + $0x18] sm:$0xff]  ;;  %v303_v13 = vld [vmem:[%s448_s3 + $0x10] sm:$0xff]  ;;  %v296_v14 = vld [vmem:[%s446_s1 + $0x8] sm:$0xff] }
   0xb   :  { %96 = vmatpush.bf16.msra.mxu0 %v300_v6  ;;  %v295_v15 = vld [vmem:[%s446_s1] sm:$0xff]  ;;  %v302_v18 = vld [vmem:[%s448_s3 + $0x8] sm:$0xff] }
   0xc   :  { %179 = vmatpush.bf16.msra.mxu1 %v306_v7  ;;  %v28_v16 = vld [vmem:[%s445_s0] sm:$0xff] }
   0xd   :  { %v29_v17 = vpack.c.bf16 %v28_v16, %v28_v16  ;;  %v301_v19 = vld [vmem:[%s448_s3] sm:$0xff] }
   0xe   :  { %v312_v20 = vld [vmem:[%s447_s2] ss:$0 sm:$0xff] }
   0xf   :  { %97 = vmatpush.bf16.msra.mxu0 %v299_v8  ;;  %v193_v26 = vld [vmem:[%s451_s6] sm:$0x3]  ;;  %s341_s6 = smov [#allocation2]  }
  0x10   :  { %180 = vmatpush.bf16.msra.mxu1 %v305_v9  ;;  %196 = vperm.xlu0 %311, %v193_v26   ;;  %v313_v28 = vld [vmem:[%s449_s4] ss:$0 sm:$0xff]  ;;  %s226_s14 = sshll.u32 %s341_s6, 4  ;;  %s228_s4 = sshll.u32 %s452_s7, 4  ;;  %s227_s14 = int_to_ptr.vmem [resolvable:$true] %s226_s14  ;;  %s229_s4 = int_to_ptr.hbm [resolvable:$true] %s228_s4 }
  0x11   :  { %v192_v35 = vld [vmem:[%s450_s5] sm:$0x1] }
  0x13   :  { %98 = vmatpush.bf16.msra.mxu0 %v298_v10 }
  0x14   :  { %181 = vmatpush.bf16.msra.mxu1 %v304_v11 }
  0x17   :  { %99 = vmatpush.bf16.msra.mxu0 %v297_v12 }
  0x18   :  { %182 = vmatpush.bf16.msra.mxu1 %v303_v13 }
  0x1b   :  { %100 = vmatpush.bf16.msra.mxu0 %v296_v14 }
  0x1c   :  { %183 = vmatpush.bf16.msra.mxu1 %v302_v18 }
  0x1f   :  { %101 = vmatpush.bf16.msra.mxu0 %v295_v15 }
  0x20   :  { %184 = vmatpush.bf16.msra.mxu1 %v301_v19 }
  0x22   :  { %261 = vmatmul.msk.bf16.vlgmr.msra.gmra.mxu0 %vm86_vm1, %v29_v17 }
  0x82   :  { %v197_v36 = vpop.permute.xlu0 %196 }
  0x9f   :  { %v103_v21 = vpop.f32.mrf.mxu0 }
  0xa0   :  { %v104_v22 = vadd.f32 %v312_v20, %v103_v21 }
  0xa2   :  { %v107_v23 = vmax.f32 %v104_v22, 0.0 }
  0xa4   :  { %v108_v24 = vpack.c.bf16 %v107_v23, %v107_v23 }
  0xa6   :  { %185 = vmatmul.bf16.vlgmr.msra.gmra.mxu1 %v108_v24 }
  0xa7   :  { %v105_v25 = vpop.f32.mrf.mxu0 }
 0x123   :  { %v186_v29 = vpop.f32.mrf.mxu1 }
 0x124   :  { %v187_v30 = vadd.f32 %v313_v28, %v186_v29 }
 0x126   :  { %v190_v31 = vmax.f32 %v187_v30, 0.0 }
 0x128   :  { %v191_v32 = vpack.c.bf16 %v190_v31, %v190_v31 }
 0x12a   :  { %v204_v33 = vsel %vm199_vm2, %v191_v32, 0 }
 0x12b   :  { %v188_v34 = vpop.f32.mrf.mxu1  ;;  %213 = vmatpush.bf16.xpose.msra.mxu2 %v204_v33 }
 0x132   :  { %294 = vmatmul.msk.bf16.vlgmr.msra.gmra.mxu2 %vm199_vm2, %v192_v35 }
 0x1b5   :  { %v215_v37 = vpop.f32.mrf.mxu2 }
 0x1b6   :  { %v216_v38 = vadd.f32 %v215_v37, %v197_v36 }
 0x1b8   :  { %220 = vst.msk [vmem:[#allocation2] sm:$0x3] %vm219_vm3, %v216_v38 }
 0x1b9   :  { %231 = dma.vmem_to_hbm [thread:$0]  %s227_s14, 32, %s229_s4, [#allocation3]  }
 0x1bd   :  { %v217_v39 = vpop.f32.mrf.mxu2 }
 0x1be   :  { %338 = dma.done.wait [#allocation3], 32  }
 0x1bf   :  { %339 = vsyncadd [#allocation3], 4294967264 }
 0x1c0   :  { %236 = vsyncpa [#allocation3], 1 }

</bundles_post_ra>
